<compile_context>
chip_gen: v7x
topology: tpu7x:2x2x1
jax: 0.10.0
libtpu: 0.0.40
codegen_flags: <defaults>
</compile_context>

<pallas_src>
import functools

import jax
import jax.numpy as jnp
from jax.experimental import pallas as pl
from jax.experimental.pallas import tpu as pltpu


# ----------------------------------------------------------------------------- kernels


def _folded_kernel(hs_ref, w_ref, b_ref, o_ref, *, stream_w):
    """Folded-weight path: o += hs_l @ (lw_d[l] * W_d^T), bias folded into init.

    hs_ref : VMEM (TILE_S, H)           hidden states of llm layer `li`
    w_ref  : VMEM (L, H, O_pad) or (H, O_pad) when streaming one layer per step
    b_ref  : VMEM (1, O_pad)            concatenated bias (f32)
    o_ref  : VMEM (TILE_S, O_pad) f32   resident output block == accumulator
    """
    li = pl.program_id(2)

    @pl.when(li == 0)
    def _init():
        o_ref[...] = jnp.broadcast_to(b_ref[...], o_ref.shape)

    w = w_ref[...] if stream_w else w_ref[li]
    o_ref[...] += jnp.dot(hs_ref[...], w, preferred_element_type=jnp.float32)


def _avgfirst_kernel(hs_ref, lw_ref, w_ref, b_ref, o_ref, acc_ref, *, col_blocks):
    """Average-first path: f32 VPU layer-average per decoder, one matmul at finalize.

    hs_ref : VMEM (TILE_S, H)        hidden states of llm layer `li`
    lw_ref : SMEM (L, D) f32         per-decoder layer-averaging weights
    w_ref  : VMEM (H, O_pad)         unfolded weights, 128-aligned per-decoder blocks
    b_ref  : VMEM (1, O_pad) f32     concatenated bias
    o_ref  : VMEM (TILE_S, O_pad) f32
    acc_ref: VMEM (D, TILE_S, H) f32 per-decoder averaged-hidden-state accumulators
    """
    li = pl.program_id(2)
    num_dec = len(col_blocks)

    @pl.when(li == 0)
    def _init():
        acc_ref[...] = jnp.zeros_like(acc_ref)

    x = hs_ref[...].astype(jnp.float32)
    for d in range(num_dec):
        acc_ref[d] += lw_ref[li, d] * x

    @pl.when(li == pl.num_programs(2) - 1)
    def _finalize():
        for d, (off, width) in enumerate(col_blocks):
            avg = acc_ref[d].astype(w_ref.dtype)
            o_ref[:, off:off + width] = (
                jnp.dot(avg, w_ref[:, off:off + width],
                        preferred_element_type=jnp.float32)
                + b_ref[:, off:off + width])


# ----------------------------------------------------------------------------- hw info


def _vmem_capacity_bytes():
    try:
        cap = int(pltpu.get_tpu_info().vmem_capacity_bytes)
        if cap > 0:
            return cap
    except Exception:
        pass
    kind = ""
    try:
        kind = jax.devices()[0].device_kind.lower()
    except Exception:
        pass
    return 64 * 2**20 if "v7" in kind else 128 * 2**20


def _num_parallel_cores():
    try:
        kind = jax.devices()[0].device_kind.lower().replace(" ", "")
    except Exception:
        return 1
    return 2 if any(t in kind for t in ("v7", "v4", "v5p")) else 1


def _pick_tile_s(S, B, per_row_bytes, fixed_bytes, budget_bytes, sublane, n_cores,
                 max_tile=2048):
    """Largest lane/sublane-friendly seq tile that fits the VMEM budget.

    Returns (TILE_S, S_padded); S_padded > S only when S has no aligned divisor."""
    avail = max(budget_bytes - fixed_bytes, per_row_bytes * sublane)
    limit = int(avail // max(per_row_bytes, 1))
    limit = min(limit, max_tile)
    # megacore / v7x: keep at least n_cores parallel (bi, si) blocks when splitting helps
    if n_cores > 1 and B < n_cores and S > sublane:
        limit = min(limit, max(sublane, -(-S // n_cores)))
    if limit >= S:
        return S, S  # full-extent block is always layout-legal
    limit = max(sublane, (limit // sublane) * sublane)

    def largest_divisor(align):
        t = (min(limit, S) // align) * align
        while t >= align:
            if S % t == 0:
                return t
            t -= align
        return None

    t = largest_divisor(128) or largest_divisor(sublane)
    if t is not None:
        return t, S
    # no aligned divisor of S below the limit: pad S up to a multiple of the tile
    t = limit
    return t, ((S + t - 1) // t) * t


# ----------------------------------------------------------------------------- weights


def _build_weights(params):
    """Concatenate per-decoder weights into lane-aligned column blocks.

    Returns:
      W_cat      : (H, O_pad)  f32, decoder d occupies columns [off_d, off_d+width_d)
      b_cat      : (1, O_pad)  f32
      LW         : (L, D)      f32 layer-averaging weights (column d = decoder d)
      col_blocks : list of (offset, padded_width, O, layer_in, layer_out)
      O_pad, L, D
    """
    L = params[0]["layer_averaging_weights"].shape[0]
    col_blocks, w_cols, b_cols, lw_cols = [], [], [], []
    off = 0
    for p in params:
        lin, lout = p["layer_input_size"], p["layer_output_size"]
        O = lin * lout
        width = max(128, ((O + 127) // 128) * 128)
        wT = p["mlp_weight"].astype(jnp.float32).T                       # (H, O)
        w_cols.append(jnp.pad(wT, ((0, 0), (0, width - O))))
        b_cols.append(jnp.pad(p["mlp_bias"].astype(jnp.float32), (0, width - O)))
        lw_cols.append(p["layer_averaging_weights"].astype(jnp.float32))
        col_blocks.append((off, width, O, lin, lout))
        off += width
    O_pad = off
    W_cat = jnp.concatenate(w_cols, axis=1)                              # (H, O_pad)
    b_cat = jnp.concatenate(b_cols).reshape(1, O_pad)                    # (1, O_pad)
    LW = jnp.stack(lw_cols, axis=1)                                      # (L, D)
    return W_cat, b_cat, LW, col_blocks, O_pad, L, len(params)


def _fold_layer_weights(W_cat, LW, col_blocks):
    """(L, H, O_pad) f32: column block d scaled by that decoder's lw (folded in f32)."""
    L = LW.shape[0]
    cols = [jnp.broadcast_to(LW[:, d:d + 1], (L, width))
            for d, (_off, width, *_rest) in enumerate(col_blocks)]
    col_lw = jnp.concatenate(cols, axis=1)                               # (L, O_pad)
    return col_lw[:, None, :] * W_cat[None, :, :]


# ----------------------------------------------------------------------------- pallas_call wrappers


@functools.partial(jax.jit, static_argnames=("meta", "vmem_limit"))
def _folded_forward(hidden_states, W, b, *, meta, vmem_limit):
    (B, L_total, S, S_pad, H, L, O_pad, TILE_S, stream_w) = meta
    first = L_total - L
    if S_pad != S:
        hidden_states = jnp.pad(hidden_states, ((0, 0), (0, 0), (0, S_pad - S), (0, 0)))
    grid = (B, S_pad // TILE_S, L)
    isz = jnp.dtype(hidden_states.dtype).itemsize

    if stream_w:
        w_spec = pl.BlockSpec((None, H, O_pad), lambda bi, si, li: (li, 0, 0))
    else:
        w_spec = pl.BlockSpec((L, H, O_pad), lambda bi, si, li: (0, 0, 0))

    cost = pl.CostEstimate(
        flops=2 * B * S_pad * H * O_pad * L,
        transcendentals=0,
        bytes_accessed=(B * L * S_pad * H * isz + L * H * O_pad * isz
                        + B * S_pad * O_pad * 4 + O_pad * 4))

    return pl.pallas_call(
        functools.partial(_folded_kernel, stream_w=stream_w),
        grid=grid,
        in_specs=[
            pl.BlockSpec((None, None, TILE_S, H),
                         lambda bi, si, li: (bi, first + li, si, 0)),
            w_spec,
            pl.BlockSpec((1, O_pad), lambda bi, si, li: (0, 0)),
        ],
        out_specs=pl.BlockSpec((None, TILE_S, O_pad), lambda bi, si, li: (bi, si, 0)),
        out_shape=jax.ShapeDtypeStruct((B, S_pad, O_pad), jnp.float32),
        compiler_params=pltpu.CompilerParams(
            dimension_semantics=("parallel", "parallel", "arbitrary"),
            vmem_limit_bytes=vmem_limit),
        cost_estimate=cost,
    )(hidden_states, W, b)


@functools.partial(jax.jit, static_argnames=("meta", "vmem_limit"))
def _avgfirst_forward(hidden_states, LW, W, b, *, meta, vmem_limit):
    (B, L_total, S, S_pad, H, L, D, O_pad, TILE_S, col_blocks) = meta
    first = L_total - L
    if S_pad != S:
        hidden_states = jnp.pad(hidden_states, ((0, 0), (0, 0), (0, S_pad - S), (0, 0)))
    grid = (B, S_pad // TILE_S, L)
    isz = jnp.dtype(hidden_states.dtype).itemsize

    cost = pl.CostEstimate(
        flops=2 * B * S_pad * H * O_pad + 2 * B * S_pad * H * L * D,
        transcendentals=0,
        bytes_accessed=(B * L * S_pad * H * isz + H * O_pad * isz
                        + B * S_pad * O_pad * 4 + O_pad * 4))

    return pl.pallas_call(
        functools.partial(_avgfirst_kernel, col_blocks=col_blocks),
        grid=grid,
        in_specs=[
            pl.BlockSpec((None, None, TILE_S, H),
                         lambda bi, si, li: (bi, first + li, si, 0)),
            pl.BlockSpec(memory_space=pltpu.MemorySpace.SMEM),   # layer weights (L, D)
            pl.BlockSpec((H, O_pad), lambda bi, si, li: (0, 0)),
            pl.BlockSpec((1, O_pad), lambda bi, si, li: (0, 0)),
        ],
        out_specs=pl.BlockSpec((None, TILE_S, O_pad), lambda bi, si, li: (bi, si, 0)),
        out_shape=jax.ShapeDtypeStruct((B, S_pad, O_pad), jnp.float32),
        scratch_shapes=[pltpu.VMEM((D, TILE_S, H), jnp.float32)],
        compiler_params=pltpu.CompilerParams(
            dimension_semantics=("parallel", "parallel", "arbitrary"),
            vmem_limit_bytes=vmem_limit),
        cost_estimate=cost,
    )(hidden_states, LW, W, b)


# ----------------------------------------------------------------------------- public API


def occamnet_decoder_forward(hidden_states, params, path=None):
    """OccamNetDecoder.forward -> list of (B, S, layer_in, layer_out) arrays.

    `path` in {None, "folded", "avg"} (None = pick automatically).
    """
    B, L_total, S, H = hidden_states.shape
    hs_dtype = hidden_states.dtype
    isz = jnp.dtype(hs_dtype).itemsize
    W_cat, b_cat, LW, col_blocks, O_pad, L, D = _build_weights(params)
    assert L <= L_total

    cap = _vmem_capacity_bytes()
    vmem_limit = int(cap * 0.75)           # ~96 MiB v5e/v6e, ~48 MiB v7x
    budget = int(vmem_limit * 0.8)         # headroom for compiler-internal scratch
    n_cores = _num_parallel_cores()
    sublane = 8 if isz >= 4 else (16 if isz == 2 else 32)

    folded_resident = 2 * L * H * O_pad * isz + 2 * O_pad * 4
    stream_w = folded_resident > budget // 3
    mxu_flops_per_hs_byte = 2 * L * O_pad / isz  # folded path's arithmetic intensity
    use_avg = (path == "avg") or (
        path is None and L > 1 and (mxu_flops_per_hs_byte > 512 or stream_w))
    if path == "folded":
        use_avg = False

    out_row = 2 * O_pad * 4                # double-buffered f32 output block
    hs_row = 2 * H * isz                   # double-buffered hidden-state block

    if use_avg:
        per_row = hs_row + out_row + D * H * 4
        fixed = 2 * H * O_pad * isz + 2 * O_pad * 4
        TILE_S, S_pad = _pick_tile_s(S, B, per_row, fixed, budget, sublane, n_cores)
        meta = (B, L_total, S, S_pad, H, L, D, O_pad, TILE_S,
                tuple((off, width) for off, width, *_r in col_blocks))
        out = _avgfirst_forward(hidden_states, LW, W_cat.astype(hs_dtype), b_cat,
                                meta=meta, vmem_limit=vmem_limit)
    else:
        per_row = hs_row + out_row
        fixed = (2 * H * O_pad * isz if stream_w else 2 * L * H * O_pad * isz) \
            + 2 * O_pad * 4
        TILE_S, S_pad = _pick_tile_s(S, B, per_row, fixed, budget, sublane, n_cores)
        W_fold = _fold_layer_weights(W_cat, LW, col_blocks).astype(hs_dtype)
        meta = (B, L_total, S, S_pad, H, L, O_pad, TILE_S, bool(stream_w))
        out = _folded_forward(hidden_states, W_fold, b_cat,
                              meta=meta, vmem_limit=vmem_limit)

    outs = []
    for off, _width, O, lin, lout in col_blocks:
        outs.append(out[:, :S, off:off + O].reshape(B, S, lin, lout))
    return outs


def occamnet_layer_decoder_forward(hidden_states, layer_avg_w, lin_w, lin_b,
                                   layer_input_size, layer_output_size):
    """Single OccamNetLayerDecoder.forward (routed through the fused kernel)."""
    p = dict(layer_input_size=layer_input_size, layer_output_size=layer_output_size,
             mlp_weight=lin_w, mlp_bias=lin_b, layer_averaging_weights=layer_avg_w)
    return occamnet_decoder_forward(hidden_states, [p])[0]


def init_params(key, layer_input_sizes, layer_output_sizes, hidden_size, num_llm_layers):
    """Deterministic synthetic parameter init matching the module's shapes."""
    params = []
    for i, (lin_in, lin_out) in enumerate(zip(layer_input_sizes, layer_output_sizes)):
        O = lin_in * lin_out
        k_w, k_b = jax.random.split(jax.random.fold_in(key, i))
        params.append(
            dict(
                layer_input_size=lin_in,
                layer_output_size=lin_out,
                # nn.Linear(hidden_size, O): weight (O, H), bias (O,)
                mlp_weight=jax.random.normal(k_w, (O, hidden_size), jnp.float32) * 0.02,
                mlp_bias=jax.random.normal(k_b, (O,), jnp.float32) * 0.02,
                # nn.Parameter(torch.ones(L) / L), perturbed so decoders differ
                layer_averaging_weights=(jnp.ones((num_llm_layers,), jnp.float32)
                                         / num_llm_layers) * (1.0 + 0.1 * (i + 1)),
            )
        )
    return params


def _reference_forward(hidden_states, params):
    """Pure-JAX reference of the PyTorch forward, for correctness check."""
    outs = []
    for p in params:
        L = p["layer_averaging_weights"].shape[0]
        hs = hidden_states[:, -L:, :, :]
        avg = jnp.einsum("ijkl,j->ikl", hs.astype(jnp.float32),
                         p["layer_averaging_weights"])
        out = avg @ p["mlp_weight"].T + p["mlp_bias"]
        outs.append(out.reshape(out.shape[0], out.shape[1],
                                p["layer_input_size"], p["layer_output_size"]))
    return outs


if __name__ == "__main__":
    B = 2                 # batch
    L_TOTAL = 6           # total llm layers present in hidden_states
    NUM_LLM_LAYERS = 4    # occamnet_config.num_llm_layers
    S = 8                 # sequence length
    H = 32                # llm_config.hidden_size
    layer_input_sizes = [3, 2]
    layer_output_sizes = [4, 6]

    key = jax.random.PRNGKey(0)
    k_x, k_p = jax.random.split(key)
    hidden_states = jax.random.normal(k_x, (B, L_TOTAL, S, H), jnp.float32)
    params = init_params(k_p, layer_input_sizes, layer_output_sizes, H, NUM_LLM_LAYERS)

    refs = _reference_forward(hidden_states, params)

    # Exercise both kernel structures (folded weights and average-first) in f32.
    for path in ("folded", "avg"):
        outs = occamnet_decoder_forward(hidden_states, params, path=path)
        outs = [jax.block_until_ready(o) for o in outs]
        for o, r, lin, lout in zip(outs, refs, layer_input_sizes, layer_output_sizes):
            assert o.shape == (B, S, lin, lout), (path, o.shape)
            assert jnp.allclose(o, r, atol=1e-4, rtol=1e-4), (
                path, float(jnp.abs(o - r).max()))

    # bf16 hidden states exercise the native-dtype (bf16) MXU path + auto dispatch.
    hs_bf16 = hidden_states.astype(jnp.bfloat16)
    refs16 = _reference_forward(hs_bf16.astype(jnp.float32), params)
    outs16 = occamnet_decoder_forward(hs_bf16, params)
    outs16 = [jax.block_until_ready(o) for o in outs16]
    for o, r in zip(outs16, refs16):
        assert jnp.allclose(o, r, atol=5e-2, rtol=5e-2), float(jnp.abs(o - r).max())

    print("KERNEL_OK")
</pallas_src>

<mosaic_0001>
module attributes {stable_mosaic.version = 11 : i64} {
  func.func @_folded_kernel(%arg0: i32, %arg1: i32, %arg2: i32, %arg3: memref<1x1x8x32xf32, #tpu.memory_space<vmem>>, %arg4: memref<4x32x256xf32, #tpu.memory_space<vmem>>, %arg5: memref<1x256xf32, #tpu.memory_space<vmem>>, %arg6: memref<1x8x256xf32, #tpu.memory_space<vmem>>) attributes {dimension_semantics = [#tpu.dimension_semantics<parallel>, #tpu.dimension_semantics<parallel>, #tpu.dimension_semantics<arbitrary>], iteration_bounds = array<i64: 2, 1, 4>, scalar_prefetch = 0 : i64, scratch_operands = 0 : i64, tpu.core_type = #tpu.core_type<tc>, window_params = [{transform_indices = @transform_0, window_bounds = array<i64: 1, 1, 8, 32>}, {pipeline_mode = #tpu.pipeline_mode<synchronous>, transform_indices = @transform_1, window_bounds = array<i64: 4, 32, 256>}, {pipeline_mode = #tpu.pipeline_mode<synchronous>, transform_indices = @transform_2, window_bounds = array<i64: 1, 256>}, {transform_indices = @transform_3, window_bounds = array<i64: 1, 8, 256>}]} {
    %c0_i32 = arith.constant 0 : i32
    %0 = arith.cmpi eq, %arg2, %c0_i32 : i32
    %1 = arith.extui %0 : i1 to i32
    %c0_i32_0 = arith.constant 0 : i32
    %2 = arith.cmpi ne, %1, %c0_i32_0 : i32
    scf.if %2 {
      %c0_12 = arith.constant 0 : index
      %c0_13 = arith.constant 0 : index
      %15 = vector.load %arg5[%c0_12, %c0_13] : memref<1x256xf32, #tpu.memory_space<vmem>>, vector<1x256xf32>
      %16 = vector.shape_cast %15 : vector<1x256xf32> to vector<1x256xf32>
      %17 = vector.broadcast %16 : vector<1x256xf32> to vector<8x256xf32>
      %c0_14 = arith.constant 0 : index
      %c0_15 = arith.constant 0 : index
      %c0_16 = arith.constant 0 : index
      %18 = vector.load %arg6[%c0_14, %c0_15, %c0_16] : memref<1x8x256xf32, #tpu.memory_space<vmem>>, vector<1x8x256xf32>
      %19 = vector.shape_cast %18 : vector<1x8x256xf32> to vector<8x256xf32>
      %20 = vector.shape_cast %17 : vector<8x256xf32> to vector<1x8x256xf32>
      tpu.vector_store %arg6[%c0_14, %c0_15, %c0_16], %20 {strides = array<i32>} : memref<1x8x256xf32, #tpu.memory_space<vmem>>, vector<1x8x256xf32>,
    } else {
    }
    %3 = arith.index_cast %arg2 : i32 to index
    %c0 = arith.constant 0 : index
    %c0_1 = arith.constant 0 : index
    %4 = vector.load %arg4[%3, %c0, %c0_1] : memref<4x32x256xf32, #tpu.memory_space<vmem>>, vector<1x32x256xf32>
    %5 = vector.shape_cast %4 : vector<1x32x256xf32> to vector<32x256xf32>
    %c0_2 = arith.constant 0 : index
    %c0_3 = arith.constant 0 : index
    %c0_4 = arith.constant 0 : index
    %6 = vector.load %arg6[%c0_2, %c0_3, %c0_4] : memref<1x8x256xf32, #tpu.memory_space<vmem>>, vector<1x8x256xf32>
    %7 = vector.shape_cast %6 : vector<1x8x256xf32> to vector<8x256xf32>
    %c0_5 = arith.constant 0 : index
    %c0_6 = arith.constant 0 : index
    %c0_7 = arith.constant 0 : index
    %c0_8 = arith.constant 0 : index
    %8 = vector.load %arg3[%c0_5, %c0_6, %c0_7, %c0_8] : memref<1x1x8x32xf32, #tpu.memory_space<vmem>>, vector<1x1x8x32xf32>
    %9 = vector.shape_cast %8 : vector<1x1x8x32xf32> to vector<8x32xf32>
    %cst = arith.constant dense<0.000000e+00> : vector<8x256xf32>
    %10 = tpu.matmul %9, %5, %cst {dimension_numbers = #tpu.dot_dimension_numbers<[1], [0], [0], [1], [0, 0, 1, 1], [], []>} : vector<8x32xf32>, vector<32x256xf32>, vector<8x256xf32> -> vector<8x256xf32>
    %11 = arith.addf %7, %10 : vector<8x256xf32>
    %c0_9 = arith.constant 0 : index
    %c0_10 = arith.constant 0 : index
    %c0_11 = arith.constant 0 : index
    %12 = vector.load %arg6[%c0_9, %c0_10, %c0_11] : memref<1x8x256xf32, #tpu.memory_space<vmem>>, vector<1x8x256xf32>
    %13 = vector.shape_cast %12 : vector<1x8x256xf32> to vector<8x256xf32>
    %14 = vector.shape_cast %11 : vector<8x256xf32> to vector<1x8x256xf32>
    tpu.vector_store %arg6[%c0_9, %c0_10, %c0_11], %14 {strides = array<i32>} : memref<1x8x256xf32, #tpu.memory_space<vmem>>, vector<1x8x256xf32>,
    return
  }
  func.func @transform_0(%arg0: i32, %arg1: i32, %arg2: i32) -> (i32, i32, i32, i32) {
    %c2_i32 = arith.constant 2 : i32
    %0 = arith.addi %c2_i32, %arg2 : i32
    %c0_i32 = arith.constant 0 : i32
    %c0_i32_0 = arith.constant 0 : i32
    return %arg0, %0, %arg1, %c0_i32 : i32, i32, i32, i32
  }
  func.func @transform_1(%arg0: i32, %arg1: i32, %arg2: i32) -> (i32, i32, i32) {
    %c0_i32 = arith.constant 0 : i32
    %c0_i32_0 = arith.constant 0 : i32
    %c0_i32_1 = arith.constant 0 : i32
    %c0_i32_2 = arith.constant 0 : i32
    return %c0_i32, %c0_i32_0, %c0_i32_1 : i32, i32, i32
  }
  func.func @transform_2(%arg0: i32, %arg1: i32, %arg2: i32) -> (i32, i32) {
    %c0_i32 = arith.constant 0 : i32
    %c0_i32_0 = arith.constant 0 : i32
    %c0_i32_1 = arith.constant 0 : i32
    return %c0_i32, %c0_i32_0 : i32, i32
  }
  func.func @transform_3(%arg0: i32, %arg1: i32, %arg2: i32) -> (i32, i32, i32) {
    %c0_i32 = arith.constant 0 : i32
    %c0_i32_0 = arith.constant 0 : i32
    return %arg0, %arg1, %c0_i32 : i32, i32, i32
  }
}

</mosaic_0001>

<bundles_post_ra>
// kernel: _folded_forward.1
= control target key start
LH: loop header
LB: loop body
LE: loop exit
PB: predicated region body
PF: predicated region fallthrough
CT: control target
= control target key end

     0   :  { %s1185_s0 = inlined_call_operand.hbm [shape: f32[2,6,8,32], index: 0, kind: input, shape index: {}]   ;;  %s1186_s1 = inlined_call_operand.hbm [shape: f32[4,32,256], index: 1, kind: input, shape index: {}]   ;;  %s1187_s2 = inlined_call_operand.hbm [shape: f32[1,256], index: 2, kind: input, shape index: {}]   ;;  %s1188_s3 = inlined_call_operand.hbm [shape: f32[2,8,256], index: 3, kind: output, shape index: {}]  }
   0x1   :  { %1198 = sst [smem:[#allocation16_spill]] %s1186_s1 }
   0x2   :  { %1199 = sst [smem:[#allocation17_spill]] %s1187_s2 }
   0x3   :  { %8 = vsyncpa [#allocation3], 0 }
   0x4   :  { %10 = vsyncpa [#allocation3 + $0x1], 0 }
   0x5   :  { %11 = vsyncpa [#allocation6], 0 }
   0x6   :  { %12 = vsyncpa [#allocation4], 0 }
   0x7   :  { %14 = vsyncpa [#allocation4 + $0x1], 0  ;;  %s885_s12 = smov 0   ;;  %s887_s13 = smov 0  }
   0x8   :  { %s889_s14 = smov 0   ;;  %s891_s15 = smov 0  }
   0x9   :  { %s893_s16 = smov 0   ;;  %s895_s17 = smov 0  }
   0xa   :  { %s897_s18 = smov 0   ;;  %s899_s19 = smov 0  }
   0xb   :  { %s901_s20 = smov 0   ;;  %s903_s21 = smov 0  }
   0xc   :  { %s905_s22 = smov 0  }
   0xd LB: > { %1200 = sst [smem:[#allocation12_spill]] %s816_s12  ;;  %s485_s23 = sadd.s32 4294967295, %s856_s22   ;;  %s856_s22 = sphi %s905_s22, %s20_s22   ;;  %s852_s21 = sphi %s903_s21, %s1231_s21   ;;  %s848_s20 = sphi %s901_s20, %s1230_s20   ;;  %s844_s19 = sphi %s899_s19, %s1229_s19   ;;  %s840_s18 = sphi %s897_s18, %s1228_s18   ;;  %s836_s17 = sphi %s895_s17, %s1227_s17   ;;  %s832_s16 = sphi %s893_s16, %s1226_s16   ;;  %s828_s15 = sphi %s891_s15, %s1225_s15   ;;  %s824_s14 = sphi %s889_s14, %s1224_s14   ;;  %s820_s13 = sphi %s887_s13, %s1223_s13   ;;  %s816_s12 = sphi %s885_s12, %s1222_s12  }
   0xe   : > { %s486_s24 = sadd.s32 4294967294, %s856_s22   ;;  %p65_p0 = scmp.ne.s32.totalorder %s832_s16, %s828_s15 }
   0xf   : > { %p941_p1 = scmp.eq.s32.totalorder %s485_s23, 0  ;;  %p132_p2 = scmp.ne.s32.totalorder %s824_s14, %s820_s13 }
  0x10   : > { %p133_p3 = scmp.eq.s32.totalorder %s485_s23, 7  ;;  %p138_p5 = scmp.ne.s32.totalorder %s820_s13, %s816_s12 }
  0x11   : > { %s1201_s25 = scalar_select %p941_p1, 1, 0 }
  0x12   : > { %p949_p4 = por %p941_p1, %p65_p0  ;;  %p955_p6 = por %p133_p3, %p132_p2 }
  0x13   : > { %p139_p7 = scmp.eq.s32.totalorder %s486_s24, 7  ;;  %p487_p8 = scmp.ge.s32.totalorder %s856_s22, 1 }
  0x14   : > { %s1202_s26 = scalar_select %p949_p4, 1, 0 }
  0x15   : > { %s1203_s27 = scalar_select %p955_p6, 1, 0 }
  0x16   : > { %p146_p9 = scmp.lt.s32.totalorder %s856_s22, 9  ;;  %p961_p10 = por %p139_p7, %p138_p5 }
  0x17   : > { %s858_s30 = smov [#allocation5]   ;;  %s859_s6 = smov [#allocation7]  }
  0x18   : > { %s1204_s28 = scalar_select %p961_p10, 1, 0 }
  0x19   : > { %p965_p11 = pnand %p487_p8, %p146_p9  ;;  %s158_s4 = sshll.u32 %s858_s30, 4  ;;  %s159_s4 = int_to_ptr.vmem [resolvable:$true] %s158_s4 }
  0x1a   : > { %1205 = sst [smem:[#allocation13_spill]] %s1204_s28  ;;  %s172_s7 = sshll.u32 %s859_s6, 4  ;;  %s977_s7 = int_to_ptr.vmem [resolvable:$true] %s172_s7 }
  0x1b   : > { %s1206_s29 = scalar_select %p965_p11, 1, 0 }
  0x1c   : > { %p529_p12 = pneg %p965_p11  ;;  %s1208_s1 = sld [smem:[#allocation16_spill]] }
  0x1e   : > { %p973_p13 = pnand %p529_p12, %p941_p1 }
  0x20   : > { %p645_p2 = pneg %p973_p13 }
  0x22   : > { %s643_s10 = scalar_lea.hbm %s1208_s1, 4096 }
  0x23   : > { %p644_p0 = scmp.ne.s32.totalorder %s1208_s1, %s643_s10  ;;  %p650_p7 = scmp.lt.u32.totalorder %s643_s10, %s1208_s1 }
  0x25   : > { %p646_p3 = pnand %p645_p2, %p644_p0 }
  0x27   : > { %p647_p5 = pneg %p646_p3 }
  0x29   : > { %p652_p8 = pnand %p650_p7, %p647_p5 }
  0x2b   : > { %655 = shalt.err (!%p652_p8)
}
  0x2c   : > { %s656_s30 = scalar_lea.vmem %s159_s4, 4096  ;;  %p664_p6 = scmp.lt.s32.totalorder %s159_s4, %s159_s4 }
  0x2d   : > { %p657_p9 = scmp.ne.s32.totalorder %s159_s4, %s656_s30  ;;  %p665_p1 = scmp.lt.s32.totalorder %s656_s30, %s656_s30 }
  0x2f   : > { %p659_p12 = pnand %p657_p9, %p645_p2  ;;  %p666_p4 = por %p665_p1, %p664_p6 }
  0x31   : > { %p660_p10 = pneg %p659_p12 }
  0x33   : > { %p667_p11 = pnand %p666_p4, %p660_p10 }
  0x35   : > { %670 = shalt.err (!%p667_p11)
}
  0x36   : > { %s860_s6 = smov 256   ;;  %s861_s8 = smov 16  }
  0x37   : > { %532 = dma.hbm_to_vmem [thread:$0]  (!%p973_p13), %s1208_s1, 4096, %s159_s4, [#allocation6], %s860_s6, %s860_s6, %s861_s8  }
  0x38   : > { %s1209_s2 = sld [smem:[#allocation17_spill]] }
  0x3e   : > { %s671_s23 = scalar_lea.hbm %s1209_s2, 32 }
  0x3f   : > { %p672_p0 = scmp.ne.s32.totalorder %s1209_s2, %s671_s23  ;;  %p678_p6 = scmp.lt.u32.totalorder %s671_s23, %s1209_s2 }
  0x41   : > { %p674_p1 = pnand %p672_p0, %p645_p2 }
  0x43   : > { %p675_p4 = pneg %p674_p1 }
  0x45   : > { %p680_p10 = pnand %p678_p6, %p675_p4 }
  0x47   : > { %683 = shalt.err (!%p680_p10)
}
  0x48   : > { %s684_s4 = scalar_lea.vmem %s977_s7, 32  ;;  %p692_p7 = scmp.lt.s32.totalorder %s977_s7, %s977_s7 }
  0x49   : > { %p685_p11 = scmp.ne.s32.totalorder %s977_s7, %s684_s4  ;;  %p693_p8 = scmp.lt.s32.totalorder %s684_s4, %s684_s4 }
  0x4b   : > { %p687_p3 = pnand %p685_p11, %p645_p2  ;;  %p694_p9 = por %p693_p8, %p692_p7 }
  0x4d   : > { %p688_p5 = pneg %p687_p3 }
  0x4f   : > { %p695_p12 = pnand %p694_p9, %p688_p5 }
  0x51   : > { %698 = shalt.err (!%p695_p12)
}
  0x52   : > { %535 = dma.hbm_to_vmem [thread:$0]  (!%p973_p13), %s1209_s2, 32, %s977_s7, [#allocation6]  }
  0x53   : > { %s32_s6 = sadd.s32 1, %s848_s20  ;;  %s39_s5 = sadd.s32 1, %s852_s21 }
  0x54   : > { %p33_p2 = scmp.ge.s32.totalorder %s32_s6, 4  ;;  %s43_s8 = sadd.s32 2, %s848_s20 }
  0x55   : > { %s52_s9 = sadd.s32 1, %s836_s17  ;;  %p59_p0 = scmp.ne.s32.totalorder %s836_s17, %s832_s16 }
  0x56   : > { %s1233_s6 = smov (%p33_p2, %s32_s6), 0  ;;  %s1235_s5 = smov (!%p33_p2, %s39_s5), %s852_s21 }
  0x57   : > { %1210 = sst [smem:[#allocation14_spill]] %s1233_s6  ;;  %s44_s10 = sadd.s32 2, %s1233_s6 }
  0x58   : > { %p41_p1 = scmp.ge.s32.totalorder %s1235_s5, 2  ;;  %s46_s11 = ssub.s32 %s43_s8, %s44_s10 }
  0x59   : > { %p60_p13 = scmp.eq.s32.totalorder %s856_s22, 0  ;;  %s122_s7 = sadd.s32 1, %s824_s14 }
  0x5a   : > { %s1237_s5 = smov (%p41_p1, %s1235_s5), 0  ;;  %p546_p6 = scmp.lt.s32.totalorder %s856_s22, 8 }
  0x5b   : > { %1211 = sst [smem:[#allocation15_spill]] %s1237_s5  ;;  %p61_p4 = por %p60_p13, %p59_p0 }
  0x5c   : > { %s45_s15 = ssub.s32 %s852_s21, %s1237_s5  ;;  %s183_s23 = sand.u32 1, %s836_s17  }
  0x5d   : > { %s47_s24 = sor.u32 %s46_s11, %s45_s15  ;;  %p120_p10 = scmp.eq.s32.totalorder %s45_s15, 0 }
  0x5e   : > { %p50_p11 = scmp.eq.s32.totalorder %s47_s24, 0  ;;  %s491_s12 = sshll.u32 %s183_s23, 3 }
  0x5f   : > { %s1045_s30 = scalar_select %p120_p10, %s824_s14, %s122_s7  }
  0x60   : > { %s1048_s4 = scalar_select %p50_p11, %s836_s17, %s52_s9  }
  0x61   : > { %s402_s28 = smul.u32 6, %s852_s21  ;;  %p1051_p3 = pnand %p546_p6, %p61_p4 }
  0x62   : > { %s187_s1 = scalar_lea.vmem [#allocation2], %s491_s12  ;;  %s184_s24 = scalar_lea.sflag [#allocation3], %s183_s23 }
  0x63   : > { %s403_s10 = sadd.s32 %s848_s20, %s402_s28  ;;  %s198_s2 = sshll.u32 %s187_s1, 4  ;;  %s1056_s2 = int_to_ptr.vmem [resolvable:$true] %s198_s2 }
  0x64   : > { %s492_s5 = sshll.u32 %s403_s10, 7  ;;  %p701_p7 = pneg %p1051_p3 }
  0x65   : > { %s405_s7 = scalar_lea.hbm %s1185_s0, %s492_s5  ;;  %s704_s28 = scalar_lea.hbm %s1185_s0, 1536 }
  0x66   : > { %s1061_s9 = scalar_lea.hbm %s405_s7, 256  ;;  %s729_s6 = scalar_lea.hbm %s405_s7, 384 }
  0x67   : > { %p700_p5 = scmp.ne.s32.totalorder %s1061_s9, %s729_s6  ;;  %p705_p12 = scmp.lt.u32.totalorder %s1061_s9, %s1185_s0 }
  0x68   : > { %p706_p2 = scmp.lt.u32.totalorder %s704_s28, %s729_s6  ;;  %p708_p1 = scmp.lt.u32.totalorder %s729_s6, %s1061_s9 }
  0x69   : > { %p702_p8 = pnand %p701_p7, %p700_p5 }
  0x6a   : > { %p707_p0 = por %p706_p2, %p705_p12 }
  0x6b   : > { %p703_p9 = pneg %p702_p8 }
  0x6c   : > { %p709_p13 = por %p708_p1, %p707_p0 }
  0x6e   : > { %p710_p4 = pnand %p709_p13, %p703_p9 }
  0x70   : > { %713 = shalt.err (!%p710_p4)
}
  0x71   : > { %s714_s23 = scalar_lea.vmem %s1056_s2, 128  ;;  %s862_s11 = smov [#allocation2]  }
  0x72   : > { %p715_p6 = scmp.ne.s32.totalorder %s1056_s2, %s714_s23  ;;  %s719_s15 = sshll.u32 %s862_s11, 4  ;;  %s720_s15 = int_to_ptr.vmem [resolvable:$false] %s719_s15 }
  0x73   : > { %s721_s7 = scalar_lea.vmem %s720_s15, 256  ;;  %p722_p5 = scmp.lt.s32.totalorder %s1056_s2, %s720_s15 }
  0x74   : > { %p717_p10 = pnand %p715_p6, %p701_p7  ;;  %p723_p8 = scmp.lt.s32.totalorder %s721_s7, %s714_s23 }
  0x76   : > { %p718_p11 = pneg %p717_p10  ;;  %p724_p12 = por %p723_p8, %p722_p5 }
  0x78   : > { %p725_p2 = pnand %p724_p12, %p718_p11 }
  0x7a   : > { %728 = shalt.err (!%p725_p2)
}
  0x7b   : > { %539 = dma.hbm_to_vmem [thread:$0]  (!%p1051_p3), %s1061_s9, 128, %s1056_s2, %s184_s24  }
  0x7c   : > { %p1213_p9 = scmp.ne.s32.totalorder %s1206_s29, 0 }
  0x7d   : > { %s209_s6 = sand.u32 (!%p1213_p9), 1, %s832_s16   ;;  %p1214_p7 = scmp.ne.s32.totalorder (!%p1213_p9), %s1202_s26, 0 }
  0x7e   : > { %207 = sbr.rel (%p1213_p9) target bundleno = 389 (0x185), region = 32  ;;  %s1090_s1 = sshll.u32 (!%p1213_p9), %s209_s6, 3 }
  0x7f   : > { %s210_s12 = scalar_lea.sflag (!%p1213_p9), [#allocation3], %s209_s6  ;;  %s213_s28 = scalar_lea.vmem (!%p1213_p9), [#allocation2], %s1090_s1 }
  0x85   : > { %803 = dma.done.wait (%p1214_p7), %s210_s12, 128  }
  0x86   : > { %805 = vsyncadd (%p1214_p7), %s210_s12, 4294967168  ;;  %p1215_p0 = scmp.ne.s32.totalorder %s1201_s25, 0 }
  0x88   : > { %807 = dma.done.wait (%p1215_p0), [#allocation6], 4128  }
  0x89   : > { %809 = vsyncadd (%p1215_p0), [#allocation6], 4294963168  ;;  %s241_s2 = sand.u32 1, %s820_s13   ;;  %p498_p3 = scmp.ne.s32.totalorder %s840_s18, 0 }
  0x8a   : > { %s497_s29 = sshll.u32 %s241_s2, 4  ;;  %v251_v0 = vlaneseq (!%p498_p3)  ;;  %v249_v2 = vld [vmem:[#allocation7] sm:$0x3] (!%p498_p3) }
  0x8b   : > { %s1104_s8 = scalar_lea.vmem [#allocation8], %s497_s29  ;;  %248 = sbr.rel (%p498_p3) target bundleno = 147 (0x93), region = 48 }
  0x8c   : > { %v252_v1 = vshrl.u32 (!%p498_p3), %v251_v0, 7 }
  0x8e   : > { %v253_v3 = vsub.s32 (!%p498_p3), 0, %v252_v1  ;;  %v257_v4 = vsub.s32 (!%p498_p3), 1, %v252_v1 }
  0x90   : > { %v254_v5 = vrot.slane (!%p498_p3), %v249_v2, %v253_v3  ;;  %v258_v6 = vrot.slane (!%p498_p3), %v249_v2, %v257_v4 }
  0x92   : > { %261 = vst [vmem:[%s1104_s8] sm:$0xff] %v254_v5  ;;  %262 = vst [vmem:[%s1104_s8 + $0x8] sm:$0xff] %v258_v6 }
  0x93 PF: > { %s507_s25 = sshll.u32 %s840_s18, 6  ;;  %v863_v7 = vmov 0.0   ;;  %v276_v20 = vld [vmem:[%s213_s28] sm:$0xff]  ;;  %vm277_vm0 = vcmask 261120   ;;  %s508_s18 = sshll.u32 %s844_s19, 8 }
  0x94   : > { %345 = vmatprep.mubr.f32.mxu0 %v863_v7  ;;  %s265_s26 = scalar_lea.vmem [#allocation5], %s507_s25  ;;  %s373_s9 = sshll.u32 %s1104_s8, 4  ;;  %s1121_s9 = int_to_ptr.vmem [resolvable:$true] %s373_s9 }
  0x95   : > { %v267_v8 = vld [vmem:[%s265_s26 + $0x8] sm:$0xff]  ;;  %v269_v9 = vld [vmem:[%s265_s26 + $0x18] sm:$0xff]  ;;  %v266_v10 = vld [vmem:[%s265_s26] sm:$0xff]  ;;  %s1119_s5 = scalar_lea.hbm %s1188_s3, %s508_s18  ;;  %s357_s23 = scalar_lea.sflag [#allocation4], %s241_s2 }
  0x96   : > { %v509_v11 = vpack.c.bf16 %v269_v9, %v267_v8  ;;  %v268_v12 = vld [vmem:[%s265_s26 + $0x10] sm:$0xff]  ;;  %v271_v13 = vld [vmem:[%s265_s26 + $0x28] sm:$0xff]  ;;  %v273_v14 = vld [vmem:[%s265_s26 + $0x38] sm:$0xff]  ;;  %s730_s19 = scalar_lea.vmem %s1121_s9, 256  ;;  %p1216_p13 = scmp.ne.s32.totalorder %s1203_s27, 0 }
  0x97   : > { %v511_v15 = vpack.c.bf16 %v268_v12, %v266_v10  ;;  %v513_v16 = vpack.c.bf16 %v273_v14, %v271_v13  ;;  %v270_v17 = vld [vmem:[%s265_s26 + $0x20] sm:$0xff]  ;;  %v272_v18 = vld [vmem:[%s265_s26 + $0x30] sm:$0xff]  ;;  %p731_p1 = scmp.ne.s32.totalorder %s1121_s9, %s730_s19  ;;  %s864_s11 = smov [#allocation8]  }
  0x98   : > { %510 = vmatprep.subr.bf16.mxu0 %v509_v11  ;;  %v515_v19 = vpack.c.bf16 %v272_v18, %v270_v17  ;;  %s734_s15 = sshll.u32 %s864_s11, 4  ;;  %s735_s15 = int_to_ptr.vmem [resolvable:$false] %s734_s15 }
  0x99   : > { %512 = vmatpush1.bf16.msra.mxu0 %v511_v15  ;;  %v274_v21 = vld [vmem:[%s1104_s8] sm:$0xff]  ;;  %v275_v22 = vld [vmem:[%s1104_s8 + $0x8] sm:$0xff]  ;;  %p732_p4 = pnand %p731_p1, %p1216_p13  ;;  %s736_s7 = scalar_lea.vmem %s735_s15, 512 }
  0x9a   : > { %514 = vmatprep.subr.bf16.mxu0 %v513_v16  ;;  %p737_p10 = scmp.lt.s32.totalorder %s1121_s9, %s735_s15  ;;  %p738_p11 = scmp.lt.s32.totalorder %s736_s7, %s730_s19 }
  0x9b   : > { %p733_p6 = pneg %p732_p4 }
  0x9c   : > { %p739_p5 = por %p738_p11, %p737_p10 }
  0x9d   : > { %516 = vmatpush1.bf16.msra.mxu0 %v515_v19 }
  0x9e   : > { %p740_p8 = pnand %p739_p5, %p733_p6 }
  0xa0   : > { %501 = vmatmul.mubr.msk.f32.vlgmr.msra.gmra.mrb[0].mxu0 %vm277_vm0, %v276_v20 }
 0x173   : > { %v347_v23 = vpop.f32.mrb[0].mxu0 }
 0x174   : > { %v352_v24 = vadd.f32 %v347_v23, %v274_v21  ;;  %v349_v25 = vpop.f32.mrb[1].mxu0 }
 0x175   : > { %v353_v26 = vadd.f32 %v349_v25, %v275_v22 }
 0x176   : > { %354 = vst [vmem:[%s1104_s8] sm:$0xff] %v352_v24 }
 0x177   : > { %355 = vst [vmem:[%s1104_s8 + $0x8] sm:$0xff] %v353_v26 }
 0x178   : > { %743 = shalt.err (!%p740_p8)
}
 0x179   : > { %s744_s6 = scalar_lea.hbm %s1119_s5, 256  ;;  %s748_s28 = scalar_lea.hbm %s1188_s3, 512 }
 0x17a   : > { %p745_p12 = scmp.ne.s32.totalorder %s1119_s5, %s744_s6  ;;  %p749_p7 = scmp.lt.u32.totalorder %s1119_s5, %s1188_s3 }
 0x17b   : > { %p750_p0 = scmp.lt.u32.totalorder %s748_s28, %s744_s6  ;;  %p752_p1 = scmp.lt.u32.totalorder %s744_s6, %s1119_s5 }
 0x17c   : > { %p746_p2 = pnand %p745_p12, %p1216_p13 }
 0x17d   : > { %p751_p3 = por %p750_p0, %p749_p7 }
 0x17e   : > { %p747_p9 = pneg %p746_p2 }
 0x17f   : > { %p753_p4 = por %p752_p1, %p751_p3 }
 0x181   : > { %p754_p6 = pnand %p753_p4, %p747_p9 }
 0x183   : > { %757 = shalt.err (!%p754_p6)
}
 0x184   : > { %527 = dma.vmem_to_hbm [thread:$0]  (%p1216_p13), %s1121_s9, 256, %s1119_s5, %s357_s23  }
 0x185 PF: > { %s1217_s8 = sld [smem:[#allocation12_spill]]  ;;  %s1218_s25 = sld [smem:[#allocation13_spill]] }
 0x186   : > { %p549_p10 = scmp.ge.s32.totalorder %s856_s22, 2 }
 0x18b   : > { %s385_s26 = sand.u32 1, %s1217_s8   ;;  %p1219_p11 = scmp.ne.s32.totalorder %s1218_s25, 0 }
 0x18c   : > { %s386_s18 = scalar_lea.sflag [#allocation4], %s385_s26 }
 0x18d   : > { %p541_p5 = pnand %p549_p10, %p1219_p11 }
 0x18f   : > { %811 = dma.done.wait (!%p541_p5), %s386_s18, 256  }
 0x190   : > { %813 = vsyncadd (!%p541_p5), %s386_s18, 4294967040  ;;  %s20_s22 = sadd.s32 1, %s856_s22   ;;  %s1220_s27 = sld [smem:[#allocation14_spill]] }
 0x191   : > { %p17_p8 = scmp.ge.s32.totalorder %s20_s22, 10   ;;  %s1221_s9 = sld [smem:[#allocation15_spill]] }
 0x192   : > { %s1222_s12 = smov %s820_s13  ;;  %s1223_s13 = smov %s824_s14 }
 0x193   : > { %s1224_s14 = smov %s1045_s30  ;;  %s1225_s15 = smov %s832_s16 }
 0x194   : > { %s1226_s16 = smov %s836_s17  ;;  %s1227_s17 = smov %s1048_s4 }
 0x195   : > { %s1228_s18 = smov %s848_s20  ;;  %s1229_s19 = smov %s852_s21 }
 0x196   : > { %s1230_s20 = smov %s1220_s27  ;;  %19 = sbr.rel (!%p17_p8) target bundleno = 13 (0xd), region = 90 }
 0x197   : > { %s1231_s21 = smov %s1221_s9 }
 0x19d   :  { %391 = vsyncpa [#allocation3], 1 }
 0x19e   :  { %393 = vsyncpa [#allocation3 + $0x1], 1 }
 0x19f   :  { %394 = vsyncpa [#allocation6], 1 }
 0x1a0   :  { %395 = vsyncpa [#allocation4], 1 }
 0x1a1   :  { %397 = vsyncpa [#allocation4 + $0x1], 1 }

</bundles_post_ra>
